<compile_context>
chip_gen: v6e
topology: v6e:2x2x1
jax: 0.10.0
libtpu: 0.0.40
codegen_flags: <defaults>
</compile_context>

<pallas_src>
import jax
import jax.numpy as jnp
from jax.experimental import pallas as pl
from jax.experimental.pallas import tpu as pltpu


def _critic_fused_kernel(s_ref, a_ref, w1_ref, b1_ref, w2_ref, b2_ref,
                         w3_ref, b3_ref, out_ref):
    """Both Q-heads, fully fused:

      x = [state | action]
      q_h = <relu(relu(x @ W1_h + b1_h) @ W2_h + b2_h), w3_h> + b3_h
    """
    # torch.cat([state, action], 1) folded in as an in-kernel lane concat.
    x = jnp.concatenate([s_ref[...], a_ref[...]], axis=-1)   # (B, sd+ad) f32

    for h in range(2):                                        # unrolled heads
        # Layer 1: one K=(sd+ad) MXU matmul, f32 accumulate.
        h1 = jnp.dot(x, w1_ref[h], preferred_element_type=jnp.float32)
        h1 = jnp.maximum(h1 + b1_ref[h], 0.0)                 # (B, 400)

        # Layer 2.
        h2 = jnp.dot(h1, w2_ref[h], preferred_element_type=jnp.float32)
        h2 = jnp.maximum(h2 + b2_ref[h], 0.0)                 # (B, 300)

        # Layer 3 (300 -> 1): VPU multiply + lane reduction; scalar bias from
        # SMEM added after the reduce.
        q = jnp.sum(h2 * w3_ref[h], axis=-1, keepdims=True) + b3_ref[h]

        out_ref[:, h:h + 1] = q.astype(out_ref.dtype)         # (B, 1) column


@jax.jit
def critic_forward(params, state, action):
    """Equivalent of Critic.forward(state, action) -> (q1, q2)."""
    batch = state.shape[0]
    vmem = pl.BlockSpec(memory_space=pltpu.MemorySpace.VMEM)
    smem = pl.BlockSpec(memory_space=pltpu.MemorySpace.SMEM)

    out = pl.pallas_call(
        _critic_fused_kernel,
        out_shape=jax.ShapeDtypeStruct((batch, 2), jnp.float32),
        in_specs=[
            vmem,   # state   (B, sd)          f32
            vmem,   # action  (B, ad)          f32
            vmem,   # w1      (2, sd+ad, 400)  f32
            vmem,   # b1      (2, 1, 400)      f32
            vmem,   # w2      (2, 400, 300)    f32
            vmem,   # b2      (2, 1, 300)      f32
            vmem,   # w3      (2, 1, 300)      f32
            smem,   # b3      (2,)             f32 scalar bias
        ],
        out_specs=vmem,
    )(state, action,
      params["w1"], params["b1"], params["w2"], params["b2"],
      params["w3"], params["b3"])

    return out[:, 0:1], out[:, 1:2]


def init_critic_params(key, state_dim, action_dim, hidden1=400, hidden2=300):
    """nn.Linear default init (U(-1/sqrt(fan_in), +1/sqrt(fan_in))), stacked per head."""
    in_dim = state_dim + action_dim
    sizes = [(in_dim, hidden1), (hidden1, hidden2), (hidden2, 1)]
    keys = jax.random.split(key, 2 * 2 * len(sizes))

    w1, b1, w2, b2, w3, b3 = [], [], [], [], [], []
    k = 0
    for _head in range(2):
        ws, bs = [], []
        for fan_in, fan_out in sizes:
            bound = 1.0 / (float(fan_in) ** 0.5)
            w = jax.random.uniform(keys[k], (fan_in, fan_out), jnp.float32, -bound, bound)
            k += 1
            b = jax.random.uniform(keys[k], (1, fan_out), jnp.float32, -bound, bound)
            k += 1
            ws.append(w)
            bs.append(b)
        w1.append(ws[0])                    # (in_dim, 400), merged state+action rows
        b1.append(bs[0])                    # (1, 400)
        w2.append(ws[1])                    # (400, 300)
        b2.append(bs[1])                    # (1, 300)
        w3.append(ws[2].T)                  # (1, 300) for the VPU reduce
        b3.append(bs[2][0, 0])              # scalar

    return {
        "w1": jnp.stack(w1),                # (2, in_dim, 400) f32
        "b1": jnp.stack(b1),                # (2, 1, 400)      f32
        "w2": jnp.stack(w2),                # (2, 400, 300)    f32
        "b2": jnp.stack(b2),                # (2, 1, 300)      f32
        "w3": jnp.stack(w3),                # (2, 1, 300)      f32
        "b3": jnp.stack(b3),                # (2,)             f32  -> SMEM
    }


def _reference_forward(params, state, action):
    """Pure-JAX f32 reference of the same math (mirrors the torch Critic)."""
    x = jnp.concatenate([state, action], axis=-1)

    def head(i):
        h1 = jnp.maximum(
            jnp.dot(x, params["w1"][i], preferred_element_type=jnp.float32)
            + params["b1"][i], 0.0)
        h2 = jnp.maximum(
            jnp.dot(h1, params["w2"][i], preferred_element_type=jnp.float32)
            + params["b2"][i], 0.0)
        return jnp.sum(h2 * params["w3"][i], axis=-1, keepdims=True) + params["b3"][i]

    return head(0), head(1)


if __name__ == "__main__":
    key = jax.random.PRNGKey(0)
    k_params, k_state, k_action = jax.random.split(key, 3)

    batch, state_dim, action_dim = 8, 11, 3
    params = init_critic_params(k_params, state_dim, action_dim)
    state = jax.random.normal(k_state, (batch, state_dim), jnp.float32)
    action = jax.random.normal(k_action, (batch, action_dim), jnp.float32)

    q1, q2 = critic_forward(params, state, action)
    q1 = jax.block_until_ready(q1)
    q2 = jax.block_until_ready(q2)

    r1, r2 = _reference_forward(params, state, action)
    assert q1.shape == (batch, 1) and q2.shape == (batch, 1)
    assert jnp.allclose(q1, r1, atol=1e-2, rtol=1e-2)
    assert jnp.allclose(q2, r2, atol=1e-2, rtol=1e-2)

    print("KERNEL_OK")
</pallas_src>

<mosaic_0001>
module attributes {stable_mosaic.version = 11 : i64} {
  func.func @_critic_fused_kernel(%arg0: memref<8x11xf32, #tpu.memory_space<vmem>>, %arg1: memref<8x3xf32, #tpu.memory_space<vmem>>, %arg2: memref<2x14x400xf32, #tpu.memory_space<vmem>>, %arg3: memref<2x1x400xf32, #tpu.memory_space<vmem>>, %arg4: memref<2x400x300xf32, #tpu.memory_space<vmem>>, %arg5: memref<2x1x300xf32, #tpu.memory_space<vmem>>, %arg6: memref<2x1x300xf32, #tpu.memory_space<vmem>>, %arg7: memref<2xf32, #tpu.memory_space<smem>>, %arg8: memref<8x2xf32, #tpu.memory_space<vmem>>) attributes {dimension_semantics = [], scalar_prefetch = 0 : i64, scratch_operands = 0 : i64, tpu.core_type = #tpu.core_type<tc>} {
    %c0 = arith.constant 0 : index
    %c0_0 = arith.constant 0 : index
    %0 = vector.load %arg0[%c0, %c0_0] : memref<8x11xf32, #tpu.memory_space<vmem>>, vector<8x11xf32>
    %c0_1 = arith.constant 0 : index
    %c0_2 = arith.constant 0 : index
    %1 = vector.load %arg1[%c0_1, %c0_2] : memref<8x3xf32, #tpu.memory_space<vmem>>, vector<8x3xf32>
    %2 = tpu.concatenate %0, %1 in 1 : vector<8x11xf32>, vector<8x3xf32> -> vector<8x14xf32>
    %c0_3 = arith.constant 0 : index
    %c0_4 = arith.constant 0 : index
    %c0_5 = arith.constant 0 : index
    %3 = vector.load %arg2[%c0_3, %c0_4, %c0_5] : memref<2x14x400xf32, #tpu.memory_space<vmem>>, vector<1x14x400xf32>
    %4 = vector.shape_cast %3 : vector<1x14x400xf32> to vector<14x400xf32>
    %cst = arith.constant dense<0.000000e+00> : vector<8x400xf32>
    %5 = tpu.matmul %2, %4, %cst {dimension_numbers = #tpu.dot_dimension_numbers<[1], [0], [0], [1], [0, 0, 1, 1], [], []>} : vector<8x14xf32>, vector<14x400xf32>, vector<8x400xf32> -> vector<8x400xf32>
    %c0_6 = arith.constant 0 : index
    %c0_7 = arith.constant 0 : index
    %c0_8 = arith.constant 0 : index
    %6 = vector.load %arg3[%c0_6, %c0_7, %c0_8] : memref<2x1x400xf32, #tpu.memory_space<vmem>>, vector<1x1x400xf32>
    %7 = vector.shape_cast %6 : vector<1x1x400xf32> to vector<1x400xf32>
    %8 = vector.broadcast %7 : vector<1x400xf32> to vector<8x400xf32>
    %9 = arith.addf %5, %8 : vector<8x400xf32>
    %cst_9 = arith.constant 0.000000e+00 : f32
    %10 = vector.broadcast %cst_9 : f32 to vector<8x400xf32>
    %11 = arith.maximumf %9, %10 : vector<8x400xf32>
    %c0_10 = arith.constant 0 : index
    %c0_11 = arith.constant 0 : index
    %c0_12 = arith.constant 0 : index
    %12 = vector.load %arg4[%c0_10, %c0_11, %c0_12] : memref<2x400x300xf32, #tpu.memory_space<vmem>>, vector<1x400x300xf32>
    %13 = vector.shape_cast %12 : vector<1x400x300xf32> to vector<400x300xf32>
    %cst_13 = arith.constant dense<0.000000e+00> : vector<8x300xf32>
    %14 = tpu.matmul %11, %13, %cst_13 {dimension_numbers = #tpu.dot_dimension_numbers<[1], [0], [0], [1], [0, 0, 1, 1], [], []>} : vector<8x400xf32>, vector<400x300xf32>, vector<8x300xf32> -> vector<8x300xf32>
    %c0_14 = arith.constant 0 : index
    %c0_15 = arith.constant 0 : index
    %c0_16 = arith.constant 0 : index
    %15 = vector.load %arg5[%c0_14, %c0_15, %c0_16] : memref<2x1x300xf32, #tpu.memory_space<vmem>>, vector<1x1x300xf32>
    %16 = vector.shape_cast %15 : vector<1x1x300xf32> to vector<1x300xf32>
    %17 = vector.broadcast %16 : vector<1x300xf32> to vector<8x300xf32>
    %18 = arith.addf %14, %17 : vector<8x300xf32>
    %cst_17 = arith.constant 0.000000e+00 : f32
    %19 = vector.broadcast %cst_17 : f32 to vector<8x300xf32>
    %20 = arith.maximumf %18, %19 : vector<8x300xf32>
    %c0_18 = arith.constant 0 : index
    %c0_19 = arith.constant 0 : index
    %c0_20 = arith.constant 0 : index
    %21 = vector.load %arg6[%c0_18, %c0_19, %c0_20] : memref<2x1x300xf32, #tpu.memory_space<vmem>>, vector<1x1x300xf32>
    %22 = vector.shape_cast %21 : vector<1x1x300xf32> to vector<1x300xf32>
    %23 = vector.broadcast %22 : vector<1x300xf32> to vector<8x300xf32>
    %24 = arith.mulf %20, %23 : vector<8x300xf32>
    %cst_21 = arith.constant dense<0.000000e+00> : vector<8xf32>
    %25 = vector.multi_reduction <add>, %24, %cst_21 [1] : vector<8x300xf32> to vector<8xf32>
    %26 = vector.shape_cast %25 : vector<8xf32> to vector<8x1xf32>
    %c0_22 = arith.constant 0 : index
    %27 = memref.load %arg7[%c0_22] : memref<2xf32, #tpu.memory_space<smem>>
    %28 = vector.broadcast %27 : f32 to vector<8x1xf32>
    %29 = arith.addf %26, %28 : vector<8x1xf32>
    %c0_23 = arith.constant 0 : index
    %c0_24 = arith.constant 0 : index
    %30 = vector.load %arg8[%c0_23, %c0_24] : memref<8x2xf32, #tpu.memory_space<vmem>>, vector<8x1xf32>
    tpu.vector_store %arg8[%c0_23, %c0_24], %29 {strides = array<i32>} : memref<8x2xf32, #tpu.memory_space<vmem>>, vector<8x1xf32>,
    %c1 = arith.constant 1 : index
    %c0_25 = arith.constant 0 : index
    %c0_26 = arith.constant 0 : index
    %31 = vector.load %arg2[%c1, %c0_25, %c0_26] : memref<2x14x400xf32, #tpu.memory_space<vmem>>, vector<1x14x400xf32>
    %32 = vector.shape_cast %31 : vector<1x14x400xf32> to vector<14x400xf32>
    %cst_27 = arith.constant dense<0.000000e+00> : vector<8x400xf32>
    %33 = tpu.matmul %2, %32, %cst_27 {dimension_numbers = #tpu.dot_dimension_numbers<[1], [0], [0], [1], [0, 0, 1, 1], [], []>} : vector<8x14xf32>, vector<14x400xf32>, vector<8x400xf32> -> vector<8x400xf32>
    %c1_28 = arith.constant 1 : index
    %c0_29 = arith.constant 0 : index
    %c0_30 = arith.constant 0 : index
    %34 = vector.load %arg3[%c1_28, %c0_29, %c0_30] : memref<2x1x400xf32, #tpu.memory_space<vmem>>, vector<1x1x400xf32>
    %35 = vector.shape_cast %34 : vector<1x1x400xf32> to vector<1x400xf32>
    %36 = vector.broadcast %35 : vector<1x400xf32> to vector<8x400xf32>
    %37 = arith.addf %33, %36 : vector<8x400xf32>
    %cst_31 = arith.constant 0.000000e+00 : f32
    %38 = vector.broadcast %cst_31 : f32 to vector<8x400xf32>
    %39 = arith.maximumf %37, %38 : vector<8x400xf32>
    %c1_32 = arith.constant 1 : index
    %c0_33 = arith.constant 0 : index
    %c0_34 = arith.constant 0 : index
    %40 = vector.load %arg4[%c1_32, %c0_33, %c0_34] : memref<2x400x300xf32, #tpu.memory_space<vmem>>, vector<1x400x300xf32>
    %41 = vector.shape_cast %40 : vector<1x400x300xf32> to vector<400x300xf32>
    %cst_35 = arith.constant dense<0.000000e+00> : vector<8x300xf32>
    %42 = tpu.matmul %39, %41, %cst_35 {dimension_numbers = #tpu.dot_dimension_numbers<[1], [0], [0], [1], [0, 0, 1, 1], [], []>} : vector<8x400xf32>, vector<400x300xf32>, vector<8x300xf32> -> vector<8x300xf32>
    %c1_36 = arith.constant 1 : index
    %c0_37 = arith.constant 0 : index
    %c0_38 = arith.constant 0 : index
    %43 = vector.load %arg5[%c1_36, %c0_37, %c0_38] : memref<2x1x300xf32, #tpu.memory_space<vmem>>, vector<1x1x300xf32>
    %44 = vector.shape_cast %43 : vector<1x1x300xf32> to vector<1x300xf32>
    %45 = vector.broadcast %44 : vector<1x300xf32> to vector<8x300xf32>
    %46 = arith.addf %42, %45 : vector<8x300xf32>
    %cst_39 = arith.constant 0.000000e+00 : f32
    %47 = vector.broadcast %cst_39 : f32 to vector<8x300xf32>
    %48 = arith.maximumf %46, %47 : vector<8x300xf32>
    %c1_40 = arith.constant 1 : index
    %c0_41 = arith.constant 0 : index
    %c0_42 = arith.constant 0 : index
    %49 = vector.load %arg6[%c1_40, %c0_41, %c0_42] : memref<2x1x300xf32, #tpu.memory_space<vmem>>, vector<1x1x300xf32>
    %50 = vector.shape_cast %49 : vector<1x1x300xf32> to vector<1x300xf32>
    %51 = vector.broadcast %50 : vector<1x300xf32> to vector<8x300xf32>
    %52 = arith.mulf %48, %51 : vector<8x300xf32>
    %cst_43 = arith.constant dense<0.000000e+00> : vector<8xf32>
    %53 = vector.multi_reduction <add>, %52, %cst_43 [1] : vector<8x300xf32> to vector<8xf32>
    %54 = vector.shape_cast %53 : vector<8xf32> to vector<8x1xf32>
    %c1_44 = arith.constant 1 : index
    %55 = memref.load %arg7[%c1_44] : memref<2xf32, #tpu.memory_space<smem>>
    %56 = vector.broadcast %55 : f32 to vector<8x1xf32>
    %57 = arith.addf %54, %56 : vector<8x1xf32>
    %c0_45 = arith.constant 0 : index
    %c1_46 = arith.constant 1 : index
    %58 = vector.load %arg8[%c0_45, %c1_46] : memref<8x2xf32, #tpu.memory_space<vmem>>, vector<8x1xf32>
    tpu.vector_store %arg8[%c0_45, %c1_46], %57 {strides = array<i32>} : memref<8x2xf32, #tpu.memory_space<vmem>>, vector<8x1xf32>,
    return
  }
}

</mosaic_0001>

<bundles_post_ra>
// kernel: critic_forward.1
= control target key start
LH: loop header
LB: loop body
LE: loop exit
PB: predicated region body
PF: predicated region fallthrough
CT: control target
= control target key end

     0   :  { %13 = vsyncpa [#allocation3], 0  ;;  %s1971_s0 = inlined_call_operand.hbm [shape: f32[8,11], index: 0, kind: input, shape index: {}]   ;;  %s1972_s1 = inlined_call_operand.vmem [shape: f32[8,3], index: 1, kind: input, shape index: {}]   ;;  %s1973_s2 = inlined_call_operand.vmem [shape: f32[2,14,400], index: 2, kind: input, shape index: {}]   ;;  %s1974_s3 = inlined_call_operand.hbm [shape: f32[2,1,400], index: 3, kind: input, shape index: {}]   ;;  %s1975_s4 = inlined_call_operand.hbm [shape: f32[2,400,300], index: 4, kind: input, shape index: {}]   ;;  %s1976_s5 = inlined_call_operand.hbm [shape: f32[2,1,300], index: 5, kind: input, shape index: {}]   ;;  %s1977_s6 = inlined_call_operand.hbm [shape: f32[2,1,300], index: 6, kind: input, shape index: {}]   ;;  %s1978_s7 = inlined_call_operand.hbm [shape: f32[2], index: 7, kind: input, shape index: {}]   ;;  %s1979_s8 = inlined_call_operand.vmem [shape: f32[8,2], index: 8, kind: output, shape index: {}]  }
   0x1   :  { %14 = vsyncpa [#allocation6], 0 }
   0x2   :  { %15 = vsyncpa [#allocation9], 0 }
   0x3   :  { %16 = vsyncpa [#allocation4], 0  ;;  %s1705_s27 = smov [#allocation5]  }
   0x4   :  { %s36_s28 = sshll.u32 %s1705_s27, 4  ;;  %s37_s28 = int_to_ptr.vmem [resolvable:$true] %s36_s28 }
   0x5   :  { %s1597_s29 = scalar_lea.vmem %s37_s28, 128  ;;  %p1602_p1 = scmp.lt.s32.totalorder %s37_s28, %s37_s28 }
   0x6   :  { %p1598_p0 = scmp.ne.s32.totalorder %s37_s28, %s1597_s29  ;;  %p1603_p2 = scmp.lt.s32.totalorder %s1597_s29, %s1597_s29 }
   0x8   :  { %p1604_p3 = por %p1603_p2, %p1602_p1 }
   0xa   :  { %p1605_p4 = pnand %p1604_p3, %p1598_p0 }
   0xc   :  { %1608 = shalt.err (!%p1605_p4)
}
   0xd   :  { %s1706_s30 = smov 64   ;;  %s1707_s9 = smov 4  }
   0xe   :  { %42 = dma.hbm_to_vmem [thread:$0]  %s1974_s3, 128, %s37_s28, [#allocation6], %s1706_s30, %s1706_s30, %s1707_s9  }
   0xf   :  { %s1708_s12 = smov [#allocation8]  }
  0x10   :  { %s60_s13 = sshll.u32 %s1708_s12, 4  ;;  %s61_s13 = int_to_ptr.vmem [resolvable:$true] %s60_s13 }
  0x11   :  { %s1617_s14 = scalar_lea.vmem %s61_s13, 96  ;;  %p1622_p6 = scmp.lt.s32.totalorder %s61_s13, %s61_s13 }
  0x12   :  { %p1618_p5 = scmp.ne.s32.totalorder %s61_s13, %s1617_s14  ;;  %p1623_p7 = scmp.lt.s32.totalorder %s1617_s14, %s1617_s14 }
  0x14   :  { %p1624_p8 = por %p1623_p7, %p1622_p6 }
  0x16   :  { %p1625_p9 = pnand %p1624_p8, %p1618_p5 }
  0x18   :  { %1628 = shalt.err (!%p1625_p9)
}
  0x19   :  { %s1709_s15 = smov 48   ;;  %s1710_s16 = smov 3  }
  0x1a   :  { %66 = dma.hbm_to_vmem [thread:$0]  %s1976_s5, 96, %s61_s13, [#allocation9], %s1709_s15, %s1709_s15, %s1710_s16  }
  0x1b   :  { %s1711_s3 = smov [#allocation2]   ;;  %s1712_s20 = smov [#allocation7]  }
  0x1c   :  { %s23_s19 = sshll.u32 %s1711_s3, 4  ;;  %s48_s21 = sshll.u32 %s1712_s20, 4  ;;  %s24_s19 = int_to_ptr.vmem [resolvable:$true] %s23_s19  ;;  %s49_s21 = int_to_ptr.vmem [resolvable:$true] %s48_s21 }
  0x1d   :  { %s1637_s22 = scalar_lea.vmem %s24_s19, 128  ;;  %p1642_p11 = scmp.lt.s32.totalorder %s24_s19, %s24_s19 }
  0x1e   :  { %p1638_p10 = scmp.ne.s32.totalorder %s24_s19, %s1637_s22  ;;  %p1643_p12 = scmp.lt.s32.totalorder %s1637_s22, %s1637_s22 }
  0x20   :  { %p1644_p13 = por %p1643_p12, %p1642_p11 }
  0x22   :  { %p1645_p0 = pnand %p1644_p13, %p1638_p10 }
  0x24   :  { %1648 = shalt.err (!%p1645_p0)
}
  0x25   :  { %26 = dma.hbm_to_vmem [thread:$0]  %s1971_s0, 128, %s24_s19, [#allocation3]  }
  0x26   :  { %s1657_s25 = scalar_lea.vmem %s49_s21, 38400  ;;  %p1662_p2 = scmp.lt.s32.totalorder %s49_s21, %s49_s21 }
  0x27   :  { %p1658_p1 = scmp.ne.s32.totalorder %s49_s21, %s1657_s25  ;;  %p1663_p3 = scmp.lt.s32.totalorder %s1657_s25, %s1657_s25 }
  0x29   :  { %p1664_p4 = por %p1663_p3, %p1662_p2 }
  0x2b   :  { %p1665_p5 = pnand %p1664_p4, %p1658_p1 }
  0x2d   :  { %1668 = shalt.err (!%p1665_p5)
}
  0x2e   :  { %s1713_s5 = smov 384   ;;  %s1714_s26 = smov 24  }
  0x2f   :  { %54 = dma.hbm_to_vmem [thread:$0]  %s1975_s4, 38400, %s49_s21, [#allocation6], %s1713_s5, %s1713_s5, %s1714_s26  }
  0x30   :  { %s1715_s29 = smov [#allocation10]  }
  0x31   :  { %s72_s30 = sshll.u32 %s1715_s29, 4  ;;  %s73_s30 = int_to_ptr.vmem [resolvable:$true] %s72_s30 }
  0x32   :  { %s1677_s9 = scalar_lea.vmem %s73_s30, 96  ;;  %p1682_p7 = scmp.lt.s32.totalorder %s73_s30, %s73_s30 }
  0x33   :  { %p1678_p6 = scmp.ne.s32.totalorder %s73_s30, %s1677_s9  ;;  %p1683_p8 = scmp.lt.s32.totalorder %s1677_s9, %s1677_s9 }
  0x35   :  { %p1684_p9 = por %p1683_p8, %p1682_p7 }
  0x37   :  { %p1685_p10 = pnand %p1684_p9, %p1678_p6 }
  0x39   :  { %1688 = shalt.err (!%p1685_p10)
}
  0x3a   :  { %78 = dma.hbm_to_vmem [thread:$0]  %s1977_s6, 96, %s73_s30, [#allocation9], %s1709_s15, %s1709_s15, %s1710_s16  }
  0x3b   :  { %s1716_s11 = smov [#allocation11]  }
  0x3c   :  { %86 = dma.hbm_to_smem %s1978_s7, 16, %s1716_s11, [#allocation4]  }
  0x3d   :  { %1697 = dma.done.wait [#allocation3], 128  }
  0x3e   :  { %1698 = vsyncadd [#allocation3], 4294967168 }
  0x3f   :  { %1699 = dma.done.wait [#allocation6], 38528  }
  0x40   :  { %1700 = vsyncadd [#allocation6], 4294928768 }
  0x41   :  { %1701 = dma.done.wait [#allocation9], 192  }
  0x42   :  { %1702 = vsyncadd [#allocation9], 4294967104 }
  0x43   :  { %1703 = dma.done.wait [#allocation4], 16  }
  0x44   :  { %1704 = vsyncadd [#allocation4], 4294967280 }
  0x45   :  { %105 = sfence }
  0x46   :  { %v107_v0 = vld [vmem:[%s1972_s1] sm:$0xff]  ;;  %v119_v1 = vld [vmem:[%s1973_s2 + $0x28] sm:$0x3f]  ;;  %vm148_vm0 = vcmask 1045504   ;;  %s1717_s16 = smov 11   ;;  %v1718_v5 = vmov 0.0  }
  0x47   :  { %v115_v2 = vld [vmem:[%s1973_s2 + $0x8] sm:$0xff]  ;;  %109 = vrot.lane.b32.xlu0 %v107_v0, %s1717_s16  ;;  %1480 = vmatprep.subr.msk.mxu0 %vm148_vm0, %v119_v1  ;;  %v118_v3 = vld [vmem:[%s1973_s2 + $0x20] sm:$0x3f]  ;;  %v121_v6 = vld [vmem:[%s1973_s2 + $0x38] sm:$0x3f]  ;;  %vm112_vm1 = vcmask 89088  }
  0x48   :  { %v114_v4 = vld [vmem:[%s1973_s2] sm:$0xff]  ;;  %1481 = vmatpush1.msk.msra.mxu0 %vm148_vm0, %v118_v3  ;;  %225 = vmatprep.mubr.f32.mxu0 %v1718_v5  ;;  %v448_v8 = vld [vmem:[#allocation7 + $0x468] sm:$0xff]  ;;  %v446_v9 = vld [vmem:[#allocation7 + $0x458] sm:$0xff]  ;;  %vm144_vm2 = vcmask 113664   ;;  %vm474_vm3 = vcmask 130048   ;;  %vm784_vm4 = vcmask 359424  }
  0x49   :  { %191 = vmatprep.subr.mxu0 %v115_v2  ;;  %v449_v7 = vld [vmem:[#allocation7 + $0x470] sm:$0xff]  ;;  %v443_v11 = vld [vmem:[#allocation7 + $0x440] sm:$0xff]  ;;  %v442_v12 = vld [vmem:[#allocation7 + $0x438] sm:$0xff]  ;;  %vm792_vm5 = vcmask 7168   ;;  %s1504_s3 = sld [smem:[#allocation11 + $0x1]]  ;;  %vm1470_vm6 = vcmask 15368  }
  0x4a   :  { %192 = vmatpush1.msra.mxu0 %v114_v4  ;;  %549 = vmatprep.subr.mxu1 %v449_v7  ;;  %v445_v10 = vld [vmem:[#allocation7 + $0x450] sm:$0xff]  ;;  %v440_v13 = vld [vmem:[#allocation7 + $0x428] sm:$0xff]  ;;  %v439_v14 = vld [vmem:[#allocation7 + $0x420] sm:$0xff] }
  0x4b   :  { %1483 = vmatprep.subr.msk.mxu0 %vm148_vm0, %v121_v6  ;;  %550 = vmatpush1.msra.mxu1 %v448_v8  ;;  %v437_v15 = vld [vmem:[#allocation7 + $0x410] sm:$0xff]  ;;  %v436_v16 = vld [vmem:[#allocation7 + $0x408] sm:$0xff]  ;;  %v434_v17 = vld [vmem:[#allocation7 + $0x3f8] sm:$0xff] }
  0x4c   :  { %551 = vmatprep.subr.mxu1 %v446_v9  ;;  %v433_v18 = vld [vmem:[#allocation7 + $0x3f0] sm:$0xff]  ;;  %v431_v19 = vld [vmem:[#allocation7 + $0x3e0] sm:$0xff]  ;;  %v430_v20 = vld [vmem:[#allocation7 + $0x3d8] sm:$0xff] }
  0x4d   :  { %552 = vmatpush1.msra.mxu1 %v445_v10  ;;  %v428_v21 = vld [vmem:[#allocation7 + $0x3c8] sm:$0xff]  ;;  %v427_v22 = vld [vmem:[#allocation7 + $0x3c0] sm:$0xff]  ;;  %v425_v23 = vld [vmem:[#allocation7 + $0x3b0] sm:$0xff] }
  0x4e   :  { %553 = vmatprep.subr.mxu1 %v443_v11  ;;  %v424_v24 = vld [vmem:[#allocation7 + $0x3a8] sm:$0xff]  ;;  %v422_v25 = vld [vmem:[#allocation7 + $0x398] sm:$0xff]  ;;  %v421_v26 = vld [vmem:[#allocation7 + $0x390] sm:$0xff] }
  0x4f   :  { %554 = vmatpush1.msra.mxu1 %v442_v12  ;;  %v419_v27 = vld [vmem:[#allocation7 + $0x380] sm:$0xff]  ;;  %v418_v28 = vld [vmem:[#allocation7 + $0x378] sm:$0xff]  ;;  %v416_v29 = vld [vmem:[#allocation7 + $0x368] sm:$0xff] }
  0x50   :  { %555 = vmatprep.subr.mxu1 %v440_v13  ;;  %v415_v30 = vld [vmem:[#allocation7 + $0x360] sm:$0xff]  ;;  %v413_v31 = vld [vmem:[#allocation7 + $0x350] sm:$0xff]  ;;  %v117_v36 = vld [vmem:[%s1973_s2 + $0x18] sm:$0xff] }
  0x51   :  { %556 = vmatpush1.msra.mxu1 %v439_v14  ;;  %v106_v32 = vld [vmem:[#allocation2] sm:$0xff]  ;;  %v120_v34 = vld [vmem:[%s1973_s2 + $0x30] sm:$0x3f]  ;;  %v352_v39 = vld [vmem:[#allocation7 + $0x168] sm:$0xff] }
  0x52   :  { %557 = vmatprep.subr.mxu1 %v437_v15  ;;  %v116_v37 = vld [vmem:[%s1973_s2 + $0x10] sm:$0xff]  ;;  %v353_v38 = vld [vmem:[#allocation7 + $0x170] sm:$0xff]  ;;  %v350_v40 = vld [vmem:[#allocation7 + $0x158] sm:$0xff] }
  0x53   :  { %558 = vmatpush1.msra.mxu1 %v436_v16  ;;  %v349_v41 = vld [vmem:[#allocation7 + $0x150] sm:$0xff]  ;;  %v347_v42 = vld [vmem:[#allocation7 + $0x140] sm:$0xff]  ;;  %v346_v43 = vld [vmem:[#allocation7 + $0x138] sm:$0xff] }
  0x54   :  { %559 = vmatprep.subr.mxu1 %v434_v17  ;;  %v344_v44 = vld [vmem:[#allocation7 + $0x128] sm:$0xff]  ;;  %v343_v45 = vld [vmem:[#allocation7 + $0x120] sm:$0xff]  ;;  %v341_v46 = vld [vmem:[#allocation7 + $0x110] sm:$0xff] }
  0x55   :  { %560 = vmatpush1.msra.mxu1 %v433_v18  ;;  %v340_v47 = vld [vmem:[#allocation7 + $0x108] sm:$0xff]  ;;  %v338_v48 = vld [vmem:[#allocation7 + $0xf8] sm:$0xff]  ;;  %v337_v49 = vld [vmem:[#allocation7 + $0xf0] sm:$0xff] }
  0x56   :  { %561 = vmatprep.subr.mxu1 %v431_v19  ;;  %v335_v50 = vld [vmem:[#allocation7 + $0xe0] sm:$0xff]  ;;  %v334_v51 = vld [vmem:[#allocation7 + $0xd8] sm:$0xff]  ;;  %v332_v52 = vld [vmem:[#allocation7 + $0xc8] sm:$0xff] }
  0x57   :  { %562 = vmatpush1.msra.mxu1 %v430_v20  ;;  %v331_v53 = vld [vmem:[#allocation7 + $0xc0] sm:$0xff]  ;;  %v329_v54 = vld [vmem:[#allocation7 + $0xb0] sm:$0xff]  ;;  %v328_v55 = vld [vmem:[#allocation7 + $0xa8] sm:$0xff] }
  0x58   :  { %563 = vmatprep.subr.mxu1 %v428_v21  ;;  %v326_v56 = vld [vmem:[#allocation7 + $0x98] sm:$0xff]  ;;  %v325_v57 = vld [vmem:[#allocation7 + $0x90] sm:$0xff]  ;;  %v323_v58 = vld [vmem:[#allocation7 + $0x80] sm:$0xff] }
  0x59   :  { %564 = vmatpush1.msra.mxu1 %v427_v22  ;;  %v322_v59 = vld [vmem:[#allocation7 + $0x78] sm:$0xff]  ;;  %v320_v60 = vld [vmem:[#allocation7 + $0x68] sm:$0xff]  ;;  %v319_v61 = vld [vmem:[#allocation7 + $0x60] sm:$0xff] }
  0x5a   :  { %565 = vmatprep.subr.mxu1 %v425_v23  ;;  %v317_v62 = vld [vmem:[#allocation7 + $0x50] sm:$0xff]  ;;  %v316_v63 = vld [vmem:[#allocation7 + $0x48] sm:$0xff]  ;;  %v314_v0 = vld [vmem:[#allocation7 + $0x38] sm:$0xff] }
  0x5b   :  { %566 = vmatpush1.msra.mxu1 %v424_v24  ;;  %v313_v1 = vld [vmem:[#allocation7 + $0x30] sm:$0xff]  ;;  %v311_v2 = vld [vmem:[#allocation7 + $0x20] sm:$0xff]  ;;  %v310_v3 = vld [vmem:[#allocation7 + $0x18] sm:$0xff] }
  0x5c   :  { %567 = vmatprep.subr.mxu1 %v422_v25  ;;  %v308_v4 = vld [vmem:[#allocation7 + $0x8] sm:$0xff]  ;;  %v307_v6 = vld [vmem:[#allocation7] sm:$0xff]  ;;  %v401_v7 = vld [vmem:[#allocation7 + $0x2f0] sm:$0xff] }
  0x5d   :  { %568 = vmatpush1.msra.mxu1 %v421_v26  ;;  %v400_v8 = vld [vmem:[#allocation7 + $0x2e8] sm:$0xff]  ;;  %v398_v9 = vld [vmem:[#allocation7 + $0x2d8] sm:$0xff]  ;;  %v397_v10 = vld [vmem:[#allocation7 + $0x2d0] sm:$0xff] }
  0x5e   :  { %569 = vmatprep.subr.mxu1 %v419_v27  ;;  %v395_v11 = vld [vmem:[#allocation7 + $0x2c0] sm:$0xff]  ;;  %v394_v12 = vld [vmem:[#allocation7 + $0x2b8] sm:$0xff]  ;;  %v392_v13 = vld [vmem:[#allocation7 + $0x2a8] sm:$0xff] }
  0x5f   :  { %570 = vmatpush1.msra.mxu1 %v418_v28  ;;  %v391_v14 = vld [vmem:[#allocation7 + $0x2a0] sm:$0xff]  ;;  %v389_v15 = vld [vmem:[#allocation7 + $0x290] sm:$0xff]  ;;  %v388_v16 = vld [vmem:[#allocation7 + $0x288] sm:$0xff] }
  0x60   :  { %571 = vmatprep.subr.mxu1 %v416_v29  ;;  %v386_v17 = vld [vmem:[#allocation7 + $0x278] sm:$0xff]  ;;  %v385_v18 = vld [vmem:[#allocation7 + $0x270] sm:$0xff]  ;;  %v383_v19 = vld [vmem:[#allocation7 + $0x260] sm:$0xff] }
  0x61   :  { %572 = vmatpush1.msra.mxu1 %v415_v30  ;;  %v382_v20 = vld [vmem:[#allocation7 + $0x258] sm:$0xff]  ;;  %v380_v21 = vld [vmem:[#allocation7 + $0x248] sm:$0xff]  ;;  %v379_v22 = vld [vmem:[#allocation7 + $0x240] sm:$0xff] }
  0x62   :  { %573 = vmatprep.subr.mxu1 %v413_v31  ;;  %v377_v23 = vld [vmem:[#allocation7 + $0x230] sm:$0xff]  ;;  %v376_v24 = vld [vmem:[#allocation7 + $0x228] sm:$0xff]  ;;  %v374_v25 = vld [vmem:[#allocation7 + $0x218] sm:$0xff] }
  0x63   :  { %v373_v26 = vld [vmem:[#allocation7 + $0x210] sm:$0xff]  ;;  %v371_v27 = vld [vmem:[#allocation7 + $0x200] sm:$0xff]  ;;  %v370_v28 = vld [vmem:[#allocation7 + $0x1f8] sm:$0xff] }
  0x64   :  { %v368_v29 = vld [vmem:[#allocation7 + $0x1e8] sm:$0xff]  ;;  %v367_v30 = vld [vmem:[#allocation7 + $0x1e0] sm:$0xff]  ;;  %v365_v31 = vld [vmem:[#allocation7 + $0x1d0] sm:$0xff] }
  0xb9   :  { %v110_v33 = vpop.permute.xlu0 %109 }
  0xba   :  { %v1813_v35 = vsel %vm112_vm1, %v106_v32, %v110_v33  ;;  %v364_v32 = vld [vmem:[#allocation7 + $0x1c8] sm:$0xff] }
  0xbb   :  { %1482 = vmatmul.mubr.msk.f32.vlgmr.msra.gmra.mxu0 %vm144_vm2, %v1813_v35  ;;  %v412_v33 = vld [vmem:[#allocation7 + $0x348] sm:$0xff] }
  0xbc   :  { %1484 = vmatpush1.msk.msra.mxu0 %vm148_vm0, %v120_v34  ;;  %296 = vmatprep.mubr.f32.mxu0 %v1718_v5  ;;  %v362_v34 = vld [vmem:[#allocation7 + $0x1b8] sm:$0xff] }
  0xbd   :  { %262 = vmatprep.subr.mxu0 %v117_v36  ;;  %574 = vmatpush1.msra.mxu1 %v412_v33  ;;  %v410_v36 = vld [vmem:[#allocation7 + $0x338] sm:$0xff] }
  0xbe   :  { %263 = vmatpush1.msra.mxu0 %v116_v37  ;;  %575 = vmatprep.subr.mxu1 %v410_v36  ;;  %v361_v37 = vld [vmem:[#allocation7 + $0x1b0] sm:$0xff]  ;;  %v426_v33 = vld [vmem:[#allocation7 + $0x3b8] sm:$0xff] }
  0xbf   :  { %1485 = vmatmul.mubr.msk.f32.vlgmr.msra.gmra.mxu0 %vm144_vm2, %v1813_v35  ;;  %478 = vmatprep.subr.mxu0 %v353_v38  ;;  %v409_v38 = vld [vmem:[#allocation7 + $0x330] sm:$0xff] }
  0xc0   :  { %479 = vmatpush1.msra.mxu0 %v352_v39  ;;  %576 = vmatpush1.msra.mxu1 %v409_v38  ;;  %v359_v39 = vld [vmem:[#allocation7 + $0x1a0] sm:$0xff]  ;;  %v333_v36 = vld [vmem:[#allocation7 + $0xd0] sm:$0xff]  ;;  %v378_v38 = vld [vmem:[#allocation7 + $0x238] sm:$0xff] }
  0xc1   :  { %480 = vmatprep.subr.mxu0 %v350_v40  ;;  %v407_v40 = vld [vmem:[#allocation7 + $0x320] sm:$0xff] }
  0xc2   :  { %481 = vmatpush1.msra.mxu0 %v349_v41  ;;  %577 = vmatprep.subr.mxu1 %v407_v40  ;;  %v358_v41 = vld [vmem:[#allocation7 + $0x198] sm:$0xff]  ;;  %v420_v40 = vld [vmem:[#allocation7 + $0x388] sm:$0xff] }
  0xc3   :  { %482 = vmatprep.subr.mxu0 %v347_v42  ;;  %v406_v42 = vld [vmem:[#allocation7 + $0x318] sm:$0xff] }
  0xc4   :  { %483 = vmatpush1.msra.mxu0 %v346_v43  ;;  %578 = vmatpush1.msra.mxu1 %v406_v42  ;;  %v356_v43 = vld [vmem:[#allocation7 + $0x188] sm:$0xff]  ;;  %v327_v42 = vld [vmem:[#allocation7 + $0xa0] sm:$0xff] }
  0xc5   :  { %484 = vmatprep.subr.mxu0 %v344_v44  ;;  %v404_v44 = vld [vmem:[#allocation7 + $0x308] sm:$0xff] }
  0xc6   :  { %485 = vmatpush1.msra.mxu0 %v343_v45  ;;  %579 = vmatprep.subr.mxu1 %v404_v44  ;;  %v355_v45 = vld [vmem:[#allocation7 + $0x180] sm:$0xff]  ;;  %v372_v44 = vld [vmem:[#allocation7 + $0x208] sm:$0xff] }
  0xc7   :  { %486 = vmatprep.subr.mxu0 %v341_v46  ;;  %v403_v46 = vld [vmem:[#allocation7 + $0x300] sm:$0xff] }
  0xc8   :  { %487 = vmatpush1.msra.mxu0 %v340_v47  ;;  %580 = vmatpush1.msra.mxu1 %v403_v46  ;;  %v455_v47 = vld [vmem:[#allocation7 + $0x4a0] sm:$0xff]  ;;  %v414_v46 = vld [vmem:[#allocation7 + $0x358] sm:$0xff] }
  0xc9   :  { %488 = vmatprep.subr.mxu0 %v338_v48  ;;  %609 = vmatprep.subr.mxu1 %v455_v47  ;;  %v454_v48 = vld [vmem:[#allocation7 + $0x498] sm:$0xff]  ;;  %v369_v47 = vld [vmem:[#allocation7 + $0x1f0] sm:$0xff] }
  0xca   :  { %489 = vmatpush1.msra.mxu0 %v337_v49  ;;  %610 = vmatpush2.msra.mxu1 %v454_v48  ;;  %v452_v49 = vld [vmem:[#allocation7 + $0x488] sm:$0xff]  ;;  %v321_v48 = vld [vmem:[#allocation7 + $0x70] sm:$0xff] }
  0xcb   :  { %490 = vmatprep.subr.mxu0 %v335_v50  ;;  %611 = vmatprep.subr.mxu1 %v452_v49  ;;  %v451_v50 = vld [vmem:[#allocation7 + $0x480] sm:$0xff] }
  0xcc   :  { %491 = vmatpush1.msra.mxu0 %v334_v51  ;;  %612 = vmatpush2.msra.mxu1 %v451_v50  ;;  %v402_v51 = vld [vmem:[#allocation7 + $0x2f8] sm:$0xff]  ;;  %v411_v49 = vld [vmem:[#allocation7 + $0x340] sm:$0xff] }
  0xcd   :  { %492 = vmatprep.subr.mxu0 %v332_v52  ;;  %1505 = vmatprep.subr.mxu1 %v402_v51  ;;  %v124_v52 = vlaneseq  ;;  %v366_v50 = vld [vmem:[#allocation7 + $0x1d8] sm:$0xff] }
  0xce   :  { %493 = vmatpush1.msra.mxu0 %v331_v53  ;;  %v318_v51 = vld [vmem:[#allocation7 + $0x58] sm:$0xff] }
  0xcf   :  { %494 = vmatprep.subr.mxu0 %v329_v54  ;;  %v1828_v53 = vshrl.u32 %v124_v52, 7  ;;  %v408_v52 = vld [vmem:[#allocation7 + $0x328] sm:$0xff] }
  0xd0   :  { %495 = vmatpush1.msra.mxu0 %v328_v55  ;;  %v122_v55 = vld [vmem:[#allocation5] sm:$0xf] }
  0xd1   :  { %496 = vmatprep.subr.mxu0 %v326_v56  ;;  %v1831_v54 = vsub.s32 0, %v1828_v53  ;;  %v1834_v56 = vsub.s32 1, %v1828_v53 }
  0xd2   :  { %497 = vmatpush1.msra.mxu0 %v325_v57 }
  0xd3   :  { %498 = vmatprep.subr.mxu0 %v323_v58  ;;  %v127_v57 = vrot.slane %v122_v55, %v1831_v54  ;;  %v131_v58 = vrot.slane %v122_v55, %v1834_v56 }
  0xd4   :  { %499 = vmatpush1.msra.mxu0 %v322_v59  ;;  %v1839_v59 = vsub.s32 2, %v1828_v53 }
  0xd5   :  { %500 = vmatprep.subr.mxu0 %v320_v60  ;;  %v138_v60 = vsub.s32 3, %v1828_v53  ;;  %v1125_v53 = vld [vmem:[#allocation7 + $0x910] sm:$0xff] }
  0xd6   :  { %501 = vmatpush1.msra.mxu0 %v319_v61 }
  0xd7   :  { %502 = vmatprep.subr.mxu0 %v317_v62 }
  0xd8   :  { %503 = vmatpush1.msra.mxu0 %v316_v63 }
  0xd9   :  { %504 = vmatprep.subr.mxu0 %v314_v0 }
  0xda   :  { %505 = vmatpush1.msra.mxu0 %v313_v1  ;;  %v135_v1 = vrot.slane %v122_v55, %v1839_v59 }
  0xdb   :  { %506 = vmatprep.subr.mxu0 %v311_v2  ;;  %v139_v2 = vrot.slane %v122_v55, %v138_v60  ;;  %v363_v55 = vld [vmem:[#allocation7 + $0x1c0] sm:$0xff] }
  0xdc   :  { %507 = vmatpush1.msra.mxu0 %v310_v3 }
  0xdd   :  { %508 = vmatprep.subr.mxu0 %v308_v4 }
  0xde   :  { %509 = vmatpush1.msra.mxu0 %v307_v6 }
  0xdf   :  { %510 = vmatprep.subr.mxu0 %v401_v7 }
  0xe0   :  { %511 = vmatpush2.msra.mxu0 %v400_v8  ;;  %v450_v8 = vld [vmem:[#allocation7 + $0x478] sm:$0xff] }
  0xe1   :  { %512 = vmatprep.subr.mxu0 %v398_v9 }
  0xe2   :  { %513 = vmatpush2.msra.mxu0 %v397_v10 }
  0xe3   :  { %514 = vmatprep.subr.mxu0 %v395_v11  ;;  %v447_v11 = vld [vmem:[#allocation7 + $0x460] sm:$0xff] }
  0xe4   :  { %515 = vmatpush2.msra.mxu0 %v394_v12 }
  0xe5   :  { %516 = vmatprep.subr.mxu0 %v392_v13  ;;  %v444_v13 = vld [vmem:[#allocation7 + $0x448] sm:$0xff] }
  0xe6   :  { %517 = vmatpush2.msra.mxu0 %v391_v14 }
  0xe7   :  { %518 = vmatprep.subr.mxu0 %v389_v15  ;;  %v354_v15 = vld [vmem:[#allocation7 + $0x178] sm:$0xff] }
  0xe8   :  { %519 = vmatpush2.msra.mxu0 %v388_v16  ;;  %v399_v16 = vld [vmem:[#allocation7 + $0x2e0] sm:$0xff] }
  0xe9   :  { %520 = vmatprep.subr.mxu0 %v386_v17  ;;  %v351_v17 = vld [vmem:[#allocation7 + $0x160] sm:$0xff] }
  0xea   :  { %521 = vmatpush2.msra.mxu0 %v385_v18  ;;  %v441_v18 = vld [vmem:[#allocation7 + $0x430] sm:$0xff] }
  0xeb   :  { %522 = vmatprep.subr.mxu0 %v383_v19  ;;  %v396_v19 = vld [vmem:[#allocation7 + $0x2c8] sm:$0xff] }
  0xec   :  { %523 = vmatpush2.msra.mxu0 %v382_v20  ;;  %v348_v20 = vld [vmem:[#allocation7 + $0x148] sm:$0xff] }
  0xed   :  { %524 = vmatprep.subr.mxu0 %v380_v21  ;;  %v438_v21 = vld [vmem:[#allocation7 + $0x418] sm:$0xff] }
  0xee   :  { %525 = vmatpush2.msra.mxu0 %v379_v22  ;;  %v393_v22 = vld [vmem:[#allocation7 + $0x2b0] sm:$0xff] }
  0xef   :  { %526 = vmatprep.subr.mxu0 %v377_v23  ;;  %v345_v23 = vld [vmem:[#allocation7 + $0x130] sm:$0xff] }
  0xf0   :  { %527 = vmatpush2.msra.mxu0 %v376_v24  ;;  %v435_v24 = vld [vmem:[#allocation7 + $0x400] sm:$0xff] }
  0xf1   :  { %528 = vmatprep.subr.mxu0 %v374_v25  ;;  %v390_v25 = vld [vmem:[#allocation7 + $0x298] sm:$0xff] }
  0xf2   :  { %529 = vmatpush2.msra.mxu0 %v373_v26  ;;  %v342_v26 = vld [vmem:[#allocation7 + $0x118] sm:$0xff] }
  0xf3   :  { %530 = vmatprep.subr.mxu0 %v371_v27  ;;  %v432_v27 = vld [vmem:[#allocation7 + $0x3e8] sm:$0xff] }
  0xf4   :  { %531 = vmatpush2.msra.mxu0 %v370_v28  ;;  %v387_v28 = vld [vmem:[#allocation7 + $0x280] sm:$0xff] }
  0xf5   :  { %532 = vmatprep.subr.mxu0 %v368_v29  ;;  %v339_v29 = vld [vmem:[#allocation7 + $0x100] sm:$0xff] }
  0xf6   :  { %533 = vmatpush2.msra.mxu0 %v367_v30  ;;  %v429_v30 = vld [vmem:[#allocation7 + $0x3d0] sm:$0xff] }
  0xf7   :  { %534 = vmatprep.subr.mxu0 %v365_v31  ;;  %v384_v31 = vld [vmem:[#allocation7 + $0x268] sm:$0xff] }
  0xf8   :  { %535 = vmatpush2.msra.mxu0 %v364_v32  ;;  %v336_v32 = vld [vmem:[#allocation7 + $0xe8] sm:$0xff] }
  0xf9   :  { %536 = vmatprep.subr.mxu0 %v362_v34  ;;  %v381_v34 = vld [vmem:[#allocation7 + $0x250] sm:$0xff] }
  0xfa   :  { %537 = vmatpush2.msra.mxu0 %v361_v37  ;;  %v423_v37 = vld [vmem:[#allocation7 + $0x3a0] sm:$0xff] }
  0xfb   :  { %538 = vmatprep.subr.mxu0 %v359_v39  ;;  %v330_v39 = vld [vmem:[#allocation7 + $0xb8] sm:$0xff] }
  0xfc   :  { %539 = vmatpush2.msra.mxu0 %v358_v41  ;;  %v375_v41 = vld [vmem:[#allocation7 + $0x220] sm:$0xff] }
  0xfd   :  { %540 = vmatprep.subr.mxu0 %v356_v43  ;;  %v417_v43 = vld [vmem:[#allocation7 + $0x370] sm:$0xff] }
  0xfe   :  { %541 = vmatpush2.msra.mxu0 %v355_v45  ;;  %v324_v45 = vld [vmem:[#allocation7 + $0x88] sm:$0xff] }
  0xff   :  { %690 = vmatprep.subr.mxu0 %v1718_v5 }
 0x17b   :  { %v227_v61 = vpop.f32.mrf.mxu0 }
 0x17c   :  { %v1842_v62 = vadd.f32 %v227_v61, %v127_v57  ;;  %v315_v57 = vld [vmem:[#allocation7 + $0x40] sm:$0xff]  ;;  %v360_v61 = vld [vmem:[#allocation7 + $0x1a8] sm:$0xff] }
 0x17d   :  { %v229_v63 = vpop.f32.mrf.mxu0 }
 0x17e   :  { %v230_v0 = vadd.f32 %v229_v63, %v131_v58  ;;  %v303_v6 = vmax.f32 %v1842_v62, 0.0  ;;  %v405_v58 = vld [vmem:[#allocation7 + $0x310] sm:$0xff]  ;;  %v312_v63 = vld [vmem:[#allocation7 + $0x28] sm:$0xff] }
 0x17f   :  { %v298_v3 = vpop.f32.mrf.mxu0  ;;  %v1495_v62 = vld [vmem:[%s1973_s2 + $0x78] sm:$0x3f] }
 0x180   :  { %v304_v4 = vmax.f32 %v230_v0, 0.0  ;;  %v1848_v9 = vadd.f32 %v298_v3, %v135_v1  ;;  %v456_v0 = vld [vmem:[#allocation7 + $0x4a8] sm:$0xff]  ;;  %v357_v1 = vld [vmem:[#allocation7 + $0x190] sm:$0xff] }
 0x181   :  { %v300_v7 = vpop.f32.mrf.mxu0  ;;  %v453_v3 = vld [vmem:[#allocation7 + $0x490] sm:$0xff] }
 0x182   :  { %v301_v10 = vadd.f32 %v300_v7, %v139_v2  ;;  %542 = vmatprep.mubr.f32.mxu0 %v304_v4  ;;  %v305_v14 = vmax.f32 %v1848_v9, 0.0  ;;  %v309_v2 = vld [vmem:[#allocation7 + $0x10] sm:$0xff]  ;;  %v1491_v9 = vld [vmem:[%s1973_s2 + $0x58] sm:$0xff] }
 0x183   :  { %543 = vmatmul.mubr.f32.vlgmr.msra.gmra.mxu0 %v303_v6  ;;  %v1492_v7 = vld [vmem:[%s1973_s2 + $0x60] sm:$0x3f] }
 0x184   :  { %v306_v12 = vmax.f32 %v301_v10, 0.0  ;;  %691 = vmatpush1.msra.mxu0 %v450_v8  ;;  %v1489_v8 = vld [vmem:[%s1973_s2 + $0x48] sm:$0xff]  ;;  %v1488_v10 = vld [vmem:[%s1973_s2 + $0x40] sm:$0xff] }
 0x185   :  { %692 = vmatprep.subr.mxu0 %v1718_v5 }
 0x186   :  { %693 = vmatpush1.msra.mxu0 %v447_v11  ;;  %1486 = vmatprep.mubr.msk.f32.mxu1 %vm474_vm3, %v306_v12  ;;  %v1490_v11 = vld [vmem:[%s1973_s2 + $0x50] sm:$0xff] }
 0x187   :  { %694 = vmatprep.subr.mxu0 %v1718_v5  ;;  %1487 = vmatprep.mubr.msk.f32.mxu0 %vm474_vm3, %v306_v12  ;;  %v1031_v12 = vld [vmem:[#allocation7 + $0x620] sm:$0xff] }
 0x188   :  { %614 = vmatmul.mubr.f32.vlgmr.msra.gmra.mxu1 %v305_v14  ;;  %695 = vmatpush1.msra.mxu0 %v444_v13  ;;  %v1030_v13 = vld [vmem:[#allocation7 + $0x618] sm:$0xff] }
 0x189   :  { %1506 = vmatpush3.msra.mxu1 %v354_v15  ;;  %684 = vmatprep.mubr.f32.mxu1 %v304_v4  ;;  %v1493_v4 = vld [vmem:[%s1973_s2 + $0x68] sm:$0x3f]  ;;  %v1027_v15 = vld [vmem:[#allocation7 + $0x600] sm:$0xff] }
 0x18a   :  { %1507 = vmatprep.subr.mxu1 %v399_v16  ;;  %696 = vmatprep.subr.mxu0 %v1718_v5  ;;  %v1025_v16 = vld [vmem:[#allocation7 + $0x5f0] sm:$0xff] }
 0x18b   :  { %1508 = vmatpush3.msra.mxu1 %v351_v17  ;;  %697 = vmatpush1.msra.mxu0 %v441_v18  ;;  %v1024_v17 = vld [vmem:[#allocation7 + $0x5e8] sm:$0xff]  ;;  %v1022_v18 = vld [vmem:[#allocation7 + $0x5d8] sm:$0xff] }
 0x18c   :  { %1509 = vmatprep.subr.mxu1 %v396_v19  ;;  %698 = vmatprep.subr.mxu0 %v1718_v5  ;;  %v1021_v19 = vld [vmem:[#allocation7 + $0x5d0] sm:$0xff] }
 0x18d   :  { %1510 = vmatpush3.msra.mxu1 %v348_v20  ;;  %699 = vmatpush1.msra.mxu0 %v438_v21  ;;  %v1019_v20 = vld [vmem:[#allocation7 + $0x5c0] sm:$0xff]  ;;  %v1018_v21 = vld [vmem:[#allocation7 + $0x5b8] sm:$0xff] }
 0x18e   :  { %1511 = vmatprep.subr.mxu1 %v393_v22  ;;  %700 = vmatprep.subr.mxu0 %v1718_v5  ;;  %v1016_v22 = vld [vmem:[#allocation7 + $0x5a8] sm:$0xff] }
 0x18f   :  { %1512 = vmatpush3.msra.mxu1 %v345_v23  ;;  %701 = vmatpush1.msra.mxu0 %v435_v24  ;;  %v1015_v23 = vld [vmem:[#allocation7 + $0x5a0] sm:$0xff]  ;;  %v1012_v24 = vld [vmem:[#allocation7 + $0x588] sm:$0xff] }
 0x190   :  { %1513 = vmatprep.subr.mxu1 %v390_v25  ;;  %702 = vmatprep.subr.mxu0 %v1718_v5  ;;  %v1010_v25 = vld [vmem:[#allocation7 + $0x578] sm:$0xff] }
 0x191   :  { %1514 = vmatpush3.msra.mxu1 %v342_v26  ;;  %703 = vmatpush1.msra.mxu0 %v432_v27  ;;  %v1009_v26 = vld [vmem:[#allocation7 + $0x570] sm:$0xff]  ;;  %v1007_v27 = vld [vmem:[#allocation7 + $0x560] sm:$0xff] }
 0x192   :  { %1515 = vmatprep.subr.mxu1 %v387_v28  ;;  %704 = vmatprep.subr.mxu0 %v1718_v5  ;;  %v1006_v28 = vld [vmem:[#allocation7 + $0x558] sm:$0xff] }
 0x193   :  { %1516 = vmatpush3.msra.mxu1 %v339_v29  ;;  %705 = vmatpush1.msra.mxu0 %v429_v30  ;;  %v1004_v29 = vld [vmem:[#allocation7 + $0x548] sm:$0xff]  ;;  %v1003_v30 = vld [vmem:[#allocation7 + $0x540] sm:$0xff] }
 0x194   :  { %1517 = vmatprep.subr.mxu1 %v384_v31  ;;  %706 = vmatprep.subr.mxu0 %v1718_v5  ;;  %v1001_v31 = vld [vmem:[#allocation7 + $0x530] sm:$0xff] }
 0x195   :  { %1518 = vmatpush3.msra.mxu1 %v336_v32  ;;  %707 = vmatpush1.msra.mxu0 %v426_v33  ;;  %v1000_v32 = vld [vmem:[#allocation7 + $0x528] sm:$0xff]  ;;  %v998_v33 = vld [vmem:[#allocation7 + $0x518] sm:$0xff] }
 0x196   :  { %1519 = vmatprep.subr.mxu1 %v381_v34  ;;  %708 = vmatprep.subr.mxu0 %v1718_v5  ;;  %v997_v34 = vld [vmem:[#allocation7 + $0x510] sm:$0xff] }
 0x197   :  { %1520 = vmatpush3.msra.mxu1 %v333_v36  ;;  %709 = vmatpush1.msra.mxu0 %v423_v37  ;;  %v995_v36 = vld [vmem:[#allocation7 + $0x500] sm:$0xff]  ;;  %v994_v37 = vld [vmem:[#allocation7 + $0x4f8] sm:$0xff] }
 0x198   :  { %1521 = vmatprep.subr.mxu1 %v378_v38  ;;  %710 = vmatprep.subr.mxu0 %v1718_v5  ;;  %v992_v38 = vld [vmem:[#allocation7 + $0x4e8] sm:$0xff] }
 0x199   :  { %1522 = vmatpush3.msra.mxu1 %v330_v39  ;;  %711 = vmatpush1.msra.mxu0 %v420_v40  ;;  %v991_v39 = vld [vmem:[#allocation7 + $0x4e0] sm:$0xff]  ;;  %v989_v40 = vld [vmem:[#allocation7 + $0x4d0] sm:$0xff] }
 0x19a   :  { %1523 = vmatprep.subr.mxu1 %v375_v41  ;;  %712 = vmatprep.subr.mxu0 %v1718_v5  ;;  %v988_v41 = vld [vmem:[#allocation7 + $0x4c8] sm:$0xff] }
 0x19b   :  { %1524 = vmatpush3.msra.mxu1 %v327_v42  ;;  %713 = vmatpush1.msra.mxu0 %v417_v43  ;;  %v986_v42 = vld [vmem:[#allocation7 + $0x4b8] sm:$0xff]  ;;  %v985_v43 = vld [vmem:[#allocation7 + $0x4b0] sm:$0xff] }
 0x19c   :  { %1525 = vmatprep.subr.mxu1 %v372_v44  ;;  %714 = vmatprep.subr.mxu0 %v1718_v5  ;;  %v1127_v44 = vld [vmem:[#allocation7 + $0x920] sm:$0xff] }
 0x19d   :  { %1526 = vmatpush3.msra.mxu1 %v324_v45  ;;  %715 = vmatpush1.msra.mxu0 %v414_v46  ;;  %v1079_v45 = vld [vmem:[#allocation7 + $0x7a0] sm:$0xff]  ;;  %v1126_v46 = vld [vmem:[#allocation7 + $0x918] sm:$0xff] }
 0x19e   :  { %1527 = vmatprep.subr.mxu1 %v369_v47  ;;  %716 = vmatprep.subr.mxu0 %v1718_v5  ;;  %v1078_v47 = vld [vmem:[#allocation7 + $0x798] sm:$0xff] }
 0x19f   :  { %1528 = vmatpush3.msra.mxu1 %v321_v48  ;;  %717 = vmatpush1.msra.mxu0 %v411_v49  ;;  %v1124_v48 = vld [vmem:[#allocation7 + $0x908] sm:$0xff]  ;;  %v1123_v49 = vld [vmem:[#allocation7 + $0x900] sm:$0xff] }
 0x1a0   :  { %1529 = vmatprep.subr.mxu1 %v366_v50  ;;  %718 = vmatprep.subr.mxu0 %v1718_v5  ;;  %v1076_v50 = vld [vmem:[#allocation7 + $0x788] sm:$0xff] }
 0x1a1   :  { %1530 = vmatpush3.msra.mxu1 %v318_v51  ;;  %719 = vmatpush1.msra.mxu0 %v408_v52  ;;  %v1121_v51 = vld [vmem:[#allocation7 + $0x8f0] sm:$0xff]  ;;  %v1075_v52 = vld [vmem:[#allocation7 + $0x780] sm:$0xff] }
 0x1a2   :  { %1531 = vmatprep.subr.mxu1 %v363_v55  ;;  %720 = vmatprep.subr.mxu0 %v1718_v5  ;;  %v1120_v55 = vld [vmem:[#allocation7 + $0x8e8] sm:$0xff] }
 0x1a3   :  { %1532 = vmatpush3.msra.mxu1 %v315_v57  ;;  %721 = vmatpush1.msra.mxu0 %v405_v58  ;;  %v1118_v57 = vld [vmem:[#allocation7 + $0x8d8] sm:$0xff]  ;;  %v1073_v58 = vld [vmem:[#allocation7 + $0x770] sm:$0xff] }
 0x1a4   :  { %1533 = vmatprep.subr.mxu1 %v360_v61  ;;  %750 = vmatprep.subr.mxu0 %v1718_v5  ;;  %v1117_v61 = vld [vmem:[#allocation7 + $0x8d0] sm:$0xff] }
 0x1a5   :  { %1534 = vmatpush3.msra.mxu1 %v312_v63  ;;  %751 = vmatpush2.msra.mxu0 %v456_v0  ;;  %v1072_v63 = vld [vmem:[#allocation7 + $0x768] sm:$0xff]  ;;  %v1115_v0 = vld [vmem:[#allocation7 + $0x8c0] sm:$0xff] }
 0x1a6   :  { %1535 = vmatprep.subr.mxu1 %v357_v1  ;;  %752 = vmatprep.subr.mxu0 %v1718_v5  ;;  %v1070_v1 = vld [vmem:[#allocation7 + $0x758] sm:$0xff] }
 0x1a7   :  { %1536 = vmatpush3.msra.mxu1 %v309_v2  ;;  %753 = vmatpush2.msra.mxu0 %v453_v3  ;;  %v1114_v2 = vld [vmem:[#allocation7 + $0x8b8] sm:$0xff]  ;;  %v1069_v3 = vld [vmem:[#allocation7 + $0x750] sm:$0xff] }
 0x1a8   :  { %685 = vmatmul.mubr.f32.vlgmr.msra.gmra.mxu1 %v303_v6  ;;  %755 = vmatmul.mubr.f32.vlgmr.msra.gmra.mxu0 %v305_v14  ;;  %v1494_v6 = vld [vmem:[%s1973_s2 + $0x70] sm:$0x3f]  ;;  %v1028_v14 = vld [vmem:[#allocation7 + $0x608] sm:$0xff]  ;;  %s789_s2 = sld [smem:[#allocation11]] }
 0x1a9   :  { %1496 = vmatprep.subr.msk.mxu1 %vm148_vm0, %v1493_v4  ;;  %902 = vmatprep.mubr.f32.mxu1 %v1718_v5  ;;  %v1112_v4 = vld [vmem:[#allocation7 + $0x8a8] sm:$0xff] }
 0x1aa   :  { %1497 = vmatpush1.msk.msra.mxu1 %vm148_vm0, %v1492_v7  ;;  %1227 = vmatprep.subr.mxu0 %v1127_v44  ;;  %v1067_v7 = vld [vmem:[#allocation7 + $0x740] sm:$0xff]  ;;  %v1036_v44 = vld [vmem:[#allocation7 + $0x648] sm:$0xff] }
 0x1ab   :  { %868 = vmatprep.subr.mxu1 %v1489_v8  ;;  %1228 = vmatpush1.msra.mxu0 %v1126_v46  ;;  %v1111_v8 = vld [vmem:[#allocation7 + $0x8a0] sm:$0xff]  ;;  %v1034_v46 = vld [vmem:[#allocation7 + $0x638] sm:$0xff] }
 0x1ac   :  { %869 = vmatpush1.msra.mxu1 %v1488_v10  ;;  %1229 = vmatprep.subr.mxu0 %v1124_v48  ;;  %v1066_v10 = vld [vmem:[#allocation7 + $0x738] sm:$0xff]  ;;  %v1033_v48 = vld [vmem:[#allocation7 + $0x630] sm:$0xff] }
 0x1ad   :  { %1498 = vmatmul.mubr.msk.f32.vlgmr.msra.gmra.mxu1 %vm144_vm2, %v1813_v35  ;;  %1499 = vmatprep.subr.msk.mxu1 %vm148_vm0, %v1495_v62  ;;  %v1109_v62 = vld [vmem:[#allocation7 + $0x890] sm:$0xff] }
 0x1ae   :  { %1500 = vmatpush1.msk.msra.mxu1 %vm148_vm0, %v1494_v6  ;;  %973 = vmatprep.mubr.f32.mxu1 %v1718_v5  ;;  %v1064_v6 = vld [vmem:[#allocation7 + $0x728] sm:$0xff] }
 0x1af   :  { %939 = vmatprep.subr.mxu1 %v1491_v9  ;;  %1230 = vmatpush1.msra.mxu0 %v1123_v49  ;;  %v1108_v9 = vld [vmem:[#allocation7 + $0x888] sm:$0xff]  ;;  %v1081_v49 = vld [vmem:[#allocation7 + $0x7b0] sm:$0xff] }
 0x1b0   :  { %940 = vmatpush1.msra.mxu1 %v1490_v11  ;;  %1231 = vmatprep.subr.mxu0 %v1121_v51  ;;  %v1063_v11 = vld [vmem:[#allocation7 + $0x720] sm:$0xff]  ;;  %v1132_v51 = vld [vmem:[#allocation7 + $0x948] sm:$0xff] }
 0x1b1   :  { %1501 = vmatmul.mubr.msk.f32.vlgmr.msra.gmra.mxu1 %vm144_vm2, %v1813_v35  ;;  %1156 = vmatprep.subr.mxu1 %v1031_v12  ;;  %v1013_v35 = vld [vmem:[#allocation7 + $0x590] sm:$0xff]  ;;  %v1106_v12 = vld [vmem:[#allocation7 + $0x878] sm:$0xff] }
 0x1b2   :  { %1157 = vmatpush1.msra.mxu1 %v1030_v13  ;;  %1232 = vmatpush1.msra.mxu0 %v1120_v55  ;;  %v1061_v13 = vld [vmem:[#allocation7 + $0x710] sm:$0xff] }
 0x1b3   :  { %1158 = vmatprep.subr.mxu1 %v1028_v14  ;;  %1233 = vmatprep.subr.mxu0 %v1118_v57  ;;  %v1105_v14 = vld [vmem:[#allocation7 + $0x870] sm:$0xff]  ;;  %v1080_v57 = vld [vmem:[#allocation7 + $0x7a8] sm:$0xff] }
 0x1b4   :  { %1159 = vmatpush1.msra.mxu1 %v1027_v15  ;;  %1234 = vmatpush1.msra.mxu0 %v1117_v61  ;;  %v1060_v15 = vld [vmem:[#allocation7 + $0x708] sm:$0xff]  ;;  %v1129_v55 = vld [vmem:[#allocation7 + $0x930] sm:$0xff]  ;;  %v457_v61 = vld [vmem:[#allocation8] sm:$0x7] }
 0x1b5   :  { %1160 = vmatprep.subr.mxu1 %v1025_v16  ;;  %1235 = vmatprep.subr.mxu0 %v1115_v0  ;;  %v1103_v16 = vld [vmem:[#allocation7 + $0x860] sm:$0xff]  ;;  %v466_v0 = vrot.slane %v457_v61, %v1834_v56 }
 0x1b6   :  { %1161 = vmatpush1.msra.mxu1 %v1024_v17  ;;  %1236 = vmatpush1.msra.mxu0 %v1114_v2  ;;  %v1058_v17 = vld [vmem:[#allocation7 + $0x6f8] sm:$0xff]  ;;  %v462_v2 = vrot.slane %v457_v61, %v1831_v54 }
 0x1b7   :  { %1162 = vmatprep.subr.mxu1 %v1022_v18  ;;  %1237 = vmatprep.subr.mxu0 %v1112_v4  ;;  %v1102_v18 = vld [vmem:[#allocation7 + $0x858] sm:$0xff] }
 0x1b8   :  { %1163 = vmatpush1.msra.mxu1 %v1021_v19  ;;  %1238 = vmatpush1.msra.mxu0 %v1111_v8  ;;  %v1057_v19 = vld [vmem:[#allocation7 + $0x6f0] sm:$0xff] }
 0x1b9   :  { %1164 = vmatprep.subr.mxu1 %v1019_v20  ;;  %1239 = vmatprep.subr.mxu0 %v1109_v62  ;;  %v1100_v20 = vld [vmem:[#allocation7 + $0x848] sm:$0xff] }
 0x1ba   :  { %1165 = vmatpush1.msra.mxu1 %v1018_v21  ;;  %1240 = vmatpush1.msra.mxu0 %v1108_v9  ;;  %v1055_v21 = vld [vmem:[#allocation7 + $0x6e0] sm:$0xff]  ;;  %v470_v9 = vrot.slane %v457_v61, %v1839_v59  ;;  %v1113_v61 = vld [vmem:[#allocation7 + $0x8b0] sm:$0xff] }
 0x1bb   :  { %1166 = vmatprep.subr.mxu1 %v1016_v22  ;;  %1241 = vmatprep.subr.mxu0 %v1106_v12  ;;  %v1099_v22 = vld [vmem:[#allocation7 + $0x840] sm:$0xff] }
 0x1bc   :  { %1167 = vmatpush1.msra.mxu1 %v1015_v23  ;;  %1242 = vmatpush1.msra.mxu0 %v1105_v14  ;;  %v1054_v23 = vld [vmem:[#allocation7 + $0x6d8] sm:$0xff]  ;;  %v763_v14 = vld [vmem:[#allocation10] sm:$0x7] }
 0x1bd   :  { %1168 = vmatprep.subr.mxu1 %v1013_v35  ;;  %1243 = vmatprep.subr.mxu0 %v1103_v16  ;;  %v1097_v35 = vld [vmem:[#allocation7 + $0x830] sm:$0xff] }
 0x1be   :  { %1169 = vmatpush1.msra.mxu1 %v1012_v24  ;;  %1244 = vmatpush1.msra.mxu0 %v1102_v18  ;;  %v1052_v24 = vld [vmem:[#allocation7 + $0x6c8] sm:$0xff] }
 0x1bf   :  { %1170 = vmatprep.subr.mxu1 %v1010_v25  ;;  %1245 = vmatprep.subr.mxu0 %v1100_v20  ;;  %v1051_v25 = vld [vmem:[#allocation7 + $0x6c0] sm:$0xff] }
 0x1c0   :  { %1171 = vmatpush1.msra.mxu1 %v1009_v26  ;;  %1246 = vmatpush1.msra.mxu0 %v1099_v22  ;;  %v1049_v26 = vld [vmem:[#allocation7 + $0x6b0] sm:$0xff]  ;;  %v768_v22 = vrot.slane %v763_v14, %v1831_v54 }
 0x1c1   :  { %1172 = vmatprep.subr.mxu1 %v1007_v27  ;;  %1247 = vmatprep.subr.mxu0 %v1097_v35  ;;  %v1048_v27 = vld [vmem:[#allocation7 + $0x6a8] sm:$0xff] }
 0x1c2   :  { %1173 = vmatpush1.msra.mxu1 %v1006_v28  ;;  %v1096_v28 = vld [vmem:[#allocation7 + $0x828] sm:$0xff] }
 0x1c3   :  { %1174 = vmatprep.subr.mxu1 %v1004_v29  ;;  %v1046_v29 = vld [vmem:[#allocation7 + $0x698] sm:$0xff]  ;;  %1248 = vmatpush1.msra.mxu0 %v1096_v28 }
 0x1c4   :  { %1175 = vmatpush1.msra.mxu1 %v1003_v30  ;;  %v1094_v30 = vld [vmem:[#allocation7 + $0x818] sm:$0xff] }
 0x1c5   :  { %1176 = vmatprep.subr.mxu1 %v1001_v31  ;;  %1249 = vmatprep.subr.mxu0 %v1094_v30  ;;  %v1045_v31 = vld [vmem:[#allocation7 + $0x690] sm:$0xff] }
 0x1c6   :  { %1177 = vmatpush1.msra.mxu1 %v1000_v32  ;;  %v1093_v32 = vld [vmem:[#allocation7 + $0x810] sm:$0xff] }
 0x1c7   :  { %1178 = vmatprep.subr.mxu1 %v998_v33  ;;  %1250 = vmatpush1.msra.mxu0 %v1093_v32  ;;  %v1043_v33 = vld [vmem:[#allocation7 + $0x680] sm:$0xff] }
 0x1c8   :  { %1179 = vmatpush1.msra.mxu1 %v997_v34  ;;  %v1091_v34 = vld [vmem:[#allocation7 + $0x800] sm:$0xff] }
 0x1c9   :  { %1180 = vmatprep.subr.mxu1 %v995_v36  ;;  %1251 = vmatprep.subr.mxu0 %v1091_v34  ;;  %v1042_v36 = vld [vmem:[#allocation7 + $0x678] sm:$0xff] }
 0x1ca   :  { %1181 = vmatpush1.msra.mxu1 %v994_v37  ;;  %v1090_v37 = vld [vmem:[#allocation7 + $0x7f8] sm:$0xff] }
 0x1cb   :  { %1182 = vmatprep.subr.mxu1 %v992_v38  ;;  %1252 = vmatpush1.msra.mxu0 %v1090_v37  ;;  %v1040_v38 = vld [vmem:[#allocation7 + $0x668] sm:$0xff] }
 0x1cc   :  { %1183 = vmatpush1.msra.mxu1 %v991_v39  ;;  %v1088_v39 = vld [vmem:[#allocation7 + $0x7e8] sm:$0xff] }
 0x1cd   :  { %1184 = vmatprep.subr.mxu1 %v989_v40  ;;  %1253 = vmatprep.subr.mxu0 %v1088_v39  ;;  %v1039_v40 = vld [vmem:[#allocation7 + $0x660] sm:$0xff] }
 0x1ce   :  { %1185 = vmatpush1.msra.mxu1 %v988_v41  ;;  %v1087_v41 = vld [vmem:[#allocation7 + $0x7e0] sm:$0xff] }
 0x1cf   :  { %1186 = vmatprep.subr.mxu1 %v986_v42  ;;  %1254 = vmatpush1.msra.mxu0 %v1087_v41  ;;  %v1037_v42 = vld [vmem:[#allocation7 + $0x650] sm:$0xff] }
 0x1d0   :  { %1187 = vmatpush1.msra.mxu1 %v985_v43  ;;  %v1085_v43 = vld [vmem:[#allocation7 + $0x7d0] sm:$0xff] }
 0x1d1   :  { %1188 = vmatprep.subr.mxu1 %v1079_v45  ;;  %1255 = vmatprep.subr.mxu0 %v1085_v43  ;;  %v1084_v45 = vld [vmem:[#allocation7 + $0x7c8] sm:$0xff] }
 0x1d2   :  { %1189 = vmatpush2.msra.mxu1 %v1078_v47  ;;  %1256 = vmatpush1.msra.mxu0 %v1084_v45  ;;  %v1082_v47 = vld [vmem:[#allocation7 + $0x7b8] sm:$0xff] }
 0x1d3   :  { %1190 = vmatprep.subr.mxu1 %v1076_v50  ;;  %1257 = vmatprep.subr.mxu0 %v1082_v47  ;;  %v1133_v50 = vld [vmem:[#allocation7 + $0x950] sm:$0xff]  ;;  %v1032_v47 = vld [vmem:[#allocation7 + $0x628] sm:$0xff] }
 0x1d4   :  { %1191 = vmatpush2.msra.mxu1 %v1075_v52  ;;  %1258 = vmatpush1.msra.mxu0 %v1081_v49  ;;  %v1130_v52 = vld [vmem:[#allocation7 + $0x938] sm:$0xff]  ;;  %v1029_v49 = vld [vmem:[#allocation7 + $0x610] sm:$0xff] }
 0x1d5   :  { %1192 = vmatprep.subr.mxu1 %v1073_v58  ;;  %1287 = vmatprep.subr.mxu0 %v1133_v50  ;;  %v1119_v50 = vld [vmem:[#allocation7 + $0x8e0] sm:$0xff] }
 0x1d6   :  { %1193 = vmatpush2.msra.mxu1 %v1072_v63  ;;  %1288 = vmatpush2.msra.mxu0 %v1132_v51  ;;  %v1074_v51 = vld [vmem:[#allocation7 + $0x778] sm:$0xff] }
 0x1d7   :  { %1194 = vmatprep.subr.mxu1 %v1070_v1  ;;  %1289 = vmatprep.subr.mxu0 %v1130_v52  ;;  %v1026_v52 = vld [vmem:[#allocation7 + $0x5f8] sm:$0xff] }
 0x1d8   :  { %1195 = vmatpush2.msra.mxu1 %v1069_v3  ;;  %1290 = vmatpush2.msra.mxu0 %v1129_v55  ;;  %v1116_v55 = vld [vmem:[#allocation7 + $0x8c8] sm:$0xff] }
 0x1d9   :  { %1196 = vmatprep.subr.mxu1 %v1067_v7  ;;  %1540 = vmatprep.subr.mxu0 %v1080_v57  ;;  %v1071_v57 = vld [vmem:[#allocation7 + $0x760] sm:$0xff] }
 0x1da   :  { %1197 = vmatpush2.msra.mxu1 %v1066_v10  ;;  %v804_v10 = vld [vmem:[#allocation5 + $0x4] sm:$0xf] }
 0x1db   :  { %1198 = vmatprep.subr.mxu1 %v1064_v6  ;;  %v809_v16 = vrot.slane %v804_v10, %v1831_v54  ;;  %v817_v28 = vrot.slane %v804_v10, %v1839_v59 }
 0x1dc   :  { %1199 = vmatpush2.msra.mxu1 %v1063_v11 }
 0x1dd   :  { %1200 = vmatprep.subr.mxu1 %v1061_v13 }
 0x1de   :  { %1201 = vmatpush2.msra.mxu1 %v1060_v15 }
 0x1df   :  { %1202 = vmatprep.subr.mxu1 %v1058_v17  ;;  %v813_v17 = vrot.slane %v804_v10, %v1834_v56 }
 0x1e0   :  { %1203 = vmatpush2.msra.mxu1 %v1057_v19  ;;  %v772_v19 = vrot.slane %v763_v14, %v1834_v56 }
 0x1e1   :  { %1204 = vmatprep.subr.mxu1 %v1055_v21 }
 0x1e2   :  { %1205 = vmatpush2.msra.mxu1 %v1054_v23 }
 0x1e3   :  { %1206 = vmatprep.subr.mxu1 %v1052_v24 }
 0x1e4   :  { %1207 = vmatpush2.msra.mxu1 %v1051_v25 }
 0x1e5   :  { %1208 = vmatprep.subr.mxu1 %v1049_v26  ;;  %v776_v26 = vrot.slane %v763_v14, %v1839_v59  ;;  %v1053_v14 = vld [vmem:[#allocation7 + $0x6d0] sm:$0xff] }
 0x1e6   :  { %1209 = vmatpush2.msra.mxu1 %v1048_v27 }
 0x1e7   :  { %1210 = vmatprep.subr.mxu1 %v1046_v29  ;;  %v821_v29 = vrot.slane %v804_v10, %v138_v60  ;;  %v1104_v10 = vld [vmem:[#allocation7 + $0x868] sm:$0xff] }
 0x1e8   :  { %1211 = vmatpush2.msra.mxu1 %v1045_v31 }
 0x1e9   :  { %1212 = vmatprep.subr.mxu1 %v1043_v33 }
 0x1ea   :  { %1213 = vmatpush2.msra.mxu1 %v1042_v36 }
 0x1eb   :  { %1214 = vmatprep.subr.mxu1 %v1040_v38  ;;  %v1128_v38 = vld [vmem:[#allocation7 + $0x928] sm:$0xff] }
 0x1ec   :  { %1215 = vmatpush2.msra.mxu1 %v1039_v40 }
 0x1ed   :  { %1216 = vmatprep.subr.mxu1 %v1037_v42 }
 0x1ee   :  { %1217 = vmatpush2.msra.mxu1 %v1036_v44  ;;  %v1122_v44 = vld [vmem:[#allocation7 + $0x8f8] sm:$0xff] }
 0x1ef   :  { %1218 = vmatprep.subr.mxu1 %v1034_v46 }
 0x1f0   :  { %1219 = vmatpush2.msra.mxu1 %v1033_v48  ;;  %v1077_v48 = vld [vmem:[#allocation7 + $0x790] sm:$0xff] }
 0x1f1   :  { %1368 = vmatprep.subr.mxu1 %v1718_v5 }
 0x243   :  { %v544_v58 = vpop.f32.mrf.mxu0 }
 0x244   :  { %v545_v62 = vadd.f32 %v544_v58, %v462_v2  ;;  %v1023_v58 = vld [vmem:[#allocation7 + $0x5e0] sm:$0xff]  ;;  %v1065_v2 = vld [vmem:[#allocation7 + $0x730] sm:$0xff] }
 0x245   :  { %v546_v1 = vpop.f32.mrf.mxu0 }
 0x246   :  { %v547_v4 = vadd.f32 %v546_v1, %v466_v0  ;;  %v1020_v0 = vld [vmem:[#allocation7 + $0x5c8] sm:$0xff]  ;;  %v1110_v1 = vld [vmem:[#allocation7 + $0x898] sm:$0xff] }
 0x248   :  { %v615_v63 = vpop.f32.mrf.mxu1 }
 0x249   :  { %v616_v13 = vadd.f32 %v615_v63, %v545_v62  ;;  %v1068_v63 = vld [vmem:[#allocation7 + $0x748] sm:$0xff]  ;;  %v1059_v62 = vld [vmem:[#allocation7 + $0x700] sm:$0xff] }
 0x24a   :  { %v617_v3 = vpop.f32.mrf.mxu1 }
 0x24b   :  { %v618_v6 = vadd.f32 %v617_v3, %v547_v4  ;;  %v760_v23 = vmax.f32 %v616_v13, 0.0  ;;  %v1017_v3 = vld [vmem:[#allocation7 + $0x5b0] sm:$0xff]  ;;  %v1107_v4 = vld [vmem:[#allocation7 + $0x880] sm:$0xff]  ;;  %v1098_v13 = vld [vmem:[#allocation7 + $0x838] sm:$0xff] }
 0x24d   :  { %v761_v18 = vmax.f32 %v618_v6, 0.0  ;;  %v780_v34 = vmul.f32 %v768_v22, %v760_v23  ;;  %v1011_v6 = vld [vmem:[#allocation7 + $0x580] sm:$0xff]  ;;  %v1089_v22 = vld [vmem:[#allocation7 + $0x7f0] sm:$0xff]  ;;  %v1044_v23 = vld [vmem:[#allocation7 + $0x688] sm:$0xff] }
 0x24f   :  { %v781_v30 = vmul.f32 %v772_v19, %v761_v18  ;;  %v1002_v18 = vld [vmem:[#allocation7 + $0x538] sm:$0xff]  ;;  %v1092_v19 = vld [vmem:[#allocation7 + $0x808] sm:$0xff] }
 0x251   :  { %v783_v60 = vadd.f32 %v781_v30, %v780_v34  ;;  %v990_v30 = vld [vmem:[#allocation7 + $0x4d8] sm:$0xff]  ;;  %v1131_v34 = vld [vmem:[#allocation7 + $0x940] sm:$0xff] }
 0x268   :  { %v1537_v7 = vpop.f32.mrf.mxu1  ;;  %v756_v8 = vpop.f32.mrf.mxu0 }
 0x26a   :  { %v1538_v11 = vpop.f32.mrf.mxu1  ;;  %v758_v12 = vpop.f32.mrf.mxu0 }
 0x26b   :  { %v1539_v15 = vadd.f32 %v1538_v11, %v1537_v7  ;;  %v1062_v7 = vld [vmem:[#allocation7 + $0x718] sm:$0xff]  ;;  %v1056_v11 = vld [vmem:[#allocation7 + $0x6e8] sm:$0xff] }
 0x26c   :  { %v1008_v12 = vld [vmem:[#allocation7 + $0x568] sm:$0xff] }
 0x26d   :  { %v687_v20 = vadd.f32 %v1539_v15, %v470_v9  ;;  %v904_v21 = vpop.f32.mrf.mxu1  ;;  %v1101_v9 = vld [vmem:[#allocation7 + $0x850] sm:$0xff] }
 0x26e   :  { %v1920_v24 = vadd.f32 %v904_v21, %v809_v16  ;;  %v1005_v15 = vld [vmem:[#allocation7 + $0x550] sm:$0xff]  ;;  %v1095_v16 = vld [vmem:[#allocation7 + $0x820] sm:$0xff] }
 0x26f   :  { %v757_v35 = vadd.f32 %v756_v8, %v687_v20  ;;  %v906_v25 = vpop.f32.mrf.mxu1  ;;  %v1014_v8 = vld [vmem:[#allocation7 + $0x598] sm:$0xff]  ;;  %v1047_v20 = vld [vmem:[#allocation7 + $0x6a0] sm:$0xff] }
 0x270   :  { %v907_v27 = vadd.f32 %v906_v25, %v813_v17  ;;  %v980_v36 = vmax.f32 %v1920_v24, 0.0  ;;  %v1050_v17 = vld [vmem:[#allocation7 + $0x6b8] sm:$0xff]  ;;  %v999_v21 = vld [vmem:[#allocation7 + $0x520] sm:$0xff] }
 0x271   :  { %v762_v31 = vmax.f32 %v757_v35, 0.0  ;;  %v975_v32 = vpop.f32.mrf.mxu1  ;;  %v996_v35 = vld [vmem:[#allocation7 + $0x508] sm:$0xff]  ;;  %v1086_v25 = vld [vmem:[#allocation7 + $0x7d8] sm:$0xff] }
 0x272   :  { %v981_v33 = vmax.f32 %v907_v27, 0.0  ;;  %v1927_v40 = vadd.f32 %v975_v32, %v817_v28  ;;  %v993_v27 = vld [vmem:[#allocation7 + $0x4f0] sm:$0xff]  ;;  %v1083_v28 = vld [vmem:[#allocation7 + $0x7c0] sm:$0xff] }
 0x273   :  { %v977_v37 = vpop.f32.mrf.mxu1  ;;  %v782_v39 = vmul.f32 %v776_v26, %v762_v31  ;;  %v1041_v26 = vld [vmem:[#allocation7 + $0x670] sm:$0xff]  ;;  %v1134_v31 = vld [vmem:[#allocation7 + $0x958] sm:$0xff]  ;;  %v1035_v32 = vld [vmem:[#allocation7 + $0x640] sm:$0xff] }
 0x274   :  { %v978_v41 = vadd.f32 %v977_v37, %v821_v29  ;;  %1220 = vmatprep.mubr.f32.mxu1 %v981_v33  ;;  %v982_v46 = vmax.f32 %v1927_v40, 0.0  ;;  %v1038_v29 = vld [vmem:[#allocation7 + $0x658] sm:$0xff]  ;;  %v790_v37 = vstv %s789_s2 }
 0x275   :  { %1221 = vmatmul.mubr.f32.vlgmr.msra.gmra.mxu1 %v980_v36  ;;  %v785_v42 = vsel %vm784_vm4, %v782_v39, 0.0 }
 0x276   :  { %v983_v43 = vmax.f32 %v978_v41, 0.0  ;;  %1369 = vmatpush1.msra.mxu1 %v1128_v38  ;;  %v786_v45 = vadd.f32 %v785_v42, %v783_v60 }
 0x277   :  { %1370 = vmatprep.subr.mxu1 %v1718_v5 }
 0x278   :  { %1371 = vmatpush1.msra.mxu1 %v1125_v53  ;;  %1502 = vmatprep.mubr.msk.f32.mxu0 %vm474_vm3, %v983_v43  ;;  %v1136_v53 = vld [vmem:[#allocation8 + $0x3] sm:$0x7] }
 0x279   :  { %1372 = vmatprep.subr.mxu1 %v1718_v5  ;;  %1503 = vmatprep.mubr.msk.f32.mxu1 %vm474_vm3, %v983_v43  ;;  %v1145_v60 = vrot.slane %v1136_v53, %v1834_v56  ;;  %v1141_v24 = vrot.slane %v1136_v53, %v1831_v54 }
 0x27a   :  { %1292 = vmatmul.mubr.f32.vlgmr.msra.gmra.mxu0 %v982_v46  ;;  %1373 = vmatpush1.msra.mxu1 %v1122_v44 }
 0x27b   :  { %1541 = vmatpush3.msra.mxu0 %v1032_v47  ;;  %787 = vadd.xlane.f32.xlu0 %v786_v45  ;;  %v1149_v47 = vrot.slane %v1136_v53, %v1839_v59 }
 0x27c   :  { %1542 = vmatprep.subr.mxu0 %v1077_v48  ;;  %1362 = vmatprep.mubr.f32.mxu0 %v981_v33  ;;  %v987_v33 = vld [vmem:[#allocation7 + $0x4c0] sm:$0xff] }
 0x27d   :  { %1374 = vmatprep.subr.mxu1 %v1718_v5  ;;  %1543 = vmatpush3.msra.mxu0 %v1029_v49 }
 0x27e   :  { %1375 = vmatpush1.msra.mxu1 %v1119_v50  ;;  %1544 = vmatprep.subr.mxu0 %v1074_v51  ;;  %v1442_v50 = vld [vmem:[#allocation10 + $0x3] sm:$0x7] }
 0x27f   :  { %1376 = vmatprep.subr.mxu1 %v1718_v5  ;;  %1545 = vmatpush3.msra.mxu0 %v1026_v52 }
 0x280   :  { %1377 = vmatpush1.msra.mxu1 %v1116_v55  ;;  %1546 = vmatprep.subr.mxu0 %v1071_v57  ;;  %v1451_v57 = vrot.slane %v1442_v50, %v1834_v56 }
 0x281   :  { %1378 = vmatprep.subr.mxu1 %v1718_v5  ;;  %1547 = vmatpush3.msra.mxu0 %v1023_v58 }
 0x282   :  { %1379 = vmatpush1.msra.mxu1 %v1113_v61  ;;  %1548 = vmatprep.subr.mxu0 %v1068_v63  ;;  %v1447_v63 = vrot.slane %v1442_v50, %v1831_v54 }
 0x283   :  { %1380 = vmatprep.subr.mxu1 %v1718_v5  ;;  %1549 = vmatpush3.msra.mxu0 %v1020_v0 }
 0x284   :  { %1381 = vmatpush1.msra.mxu1 %v1110_v1  ;;  %1550 = vmatprep.subr.mxu0 %v1065_v2  ;;  %v1455_v1 = vrot.slane %v1442_v50, %v1839_v59 }
 0x285   :  { %1382 = vmatprep.subr.mxu1 %v1718_v5  ;;  %1551 = vmatpush3.msra.mxu0 %v1017_v3 }
 0x286   :  { %1383 = vmatpush1.msra.mxu1 %v1107_v4  ;;  %1552 = vmatprep.subr.mxu0 %v1062_v7 }
 0x287   :  { %1384 = vmatprep.subr.mxu1 %v1718_v5  ;;  %1553 = vmatpush3.msra.mxu0 %v1014_v8 }
 0x288   :  { %1385 = vmatpush1.msra.mxu1 %v1104_v10  ;;  %1554 = vmatprep.subr.mxu0 %v1059_v62 }
 0x289   :  { %1386 = vmatprep.subr.mxu1 %v1718_v5  ;;  %1555 = vmatpush3.msra.mxu0 %v1011_v6  ;;  %v1468_v6 = vstv %s1504_s3 }
 0x28a   :  { %1387 = vmatpush1.msra.mxu1 %v1101_v9  ;;  %1556 = vmatprep.subr.mxu0 %v1056_v11 }
 0x28b   :  { %1388 = vmatprep.subr.mxu1 %v1718_v5  ;;  %1557 = vmatpush3.msra.mxu0 %v1008_v12 }
 0x28c   :  { %1389 = vmatpush1.msra.mxu1 %v1098_v13  ;;  %1558 = vmatprep.subr.mxu0 %v1053_v14 }
 0x28d   :  { %1390 = vmatprep.subr.mxu1 %v1718_v5  ;;  %1559 = vmatpush3.msra.mxu0 %v1005_v15 }
 0x28e   :  { %1391 = vmatpush1.msra.mxu1 %v1095_v16  ;;  %1560 = vmatprep.subr.mxu0 %v1050_v17 }
 0x28f   :  { %1392 = vmatprep.subr.mxu1 %v1718_v5  ;;  %1561 = vmatpush3.msra.mxu0 %v1002_v18 }
 0x290   :  { %1393 = vmatpush1.msra.mxu1 %v1092_v19  ;;  %1562 = vmatprep.subr.mxu0 %v1047_v20 }
 0x291   :  { %1394 = vmatprep.subr.mxu1 %v1718_v5  ;;  %1563 = vmatpush3.msra.mxu0 %v999_v21 }
 0x292   :  { %1395 = vmatpush1.msra.mxu1 %v1089_v22  ;;  %1564 = vmatprep.subr.mxu0 %v1044_v23 }
 0x293   :  { %1396 = vmatprep.subr.mxu1 %v1718_v5  ;;  %1565 = vmatpush3.msra.mxu0 %v996_v35 }
 0x294   :  { %1397 = vmatpush1.msra.mxu1 %v1086_v25  ;;  %1566 = vmatprep.subr.mxu0 %v1041_v26 }
 0x295   :  { %1398 = vmatprep.subr.mxu1 %v1718_v5  ;;  %1567 = vmatpush3.msra.mxu0 %v993_v27 }
 0x296   :  { %1399 = vmatpush1.msra.mxu1 %v1083_v28  ;;  %1568 = vmatprep.subr.mxu0 %v1038_v29 }
 0x297   :  { %1428 = vmatprep.subr.mxu1 %v1718_v5  ;;  %1569 = vmatpush3.msra.mxu0 %v990_v30 }
 0x298   :  { %1429 = vmatpush2.msra.mxu1 %v1134_v31  ;;  %1570 = vmatprep.subr.mxu0 %v1035_v32 }
 0x299   :  { %1430 = vmatprep.subr.mxu1 %v1718_v5  ;;  %1571 = vmatpush3.msra.mxu0 %v987_v33 }
 0x29a   :  { %1431 = vmatpush2.msra.mxu1 %v1131_v34  ;;  %1363 = vmatmul.mubr.f32.vlgmr.msra.gmra.mxu0 %v980_v36 }
 0x29b   :  { %1433 = vmatmul.mubr.f32.vlgmr.msra.gmra.mxu1 %v982_v46 }
 0x304   :  { %v788_v38 = vpop.xlane.xlu0 %787 }
 0x305   :  { %v791_v39 = vadd.f32 %v790_v37, %v788_v38 }
 0x307   :  { %793 = vst.msk [vmem:[%s1979_s8] sm:$0xff] %vm792_vm5, %v791_v39 }
 0x335   :  { %v1222_v41 = vpop.f32.mrf.mxu1 }
 0x336   :  { %v1223_v43 = vadd.f32 %v1222_v41, %v1141_v24 }
 0x337   :  { %v1224_v42 = vpop.f32.mrf.mxu1 }
 0x338   :  { %v1225_v40 = vadd.f32 %v1224_v42, %v1145_v60 }
 0x33a   :  { %v1293_v5 = vpop.f32.mrf.mxu0 }
 0x33b   :  { %v1294_v48 = vadd.f32 %v1293_v5, %v1223_v43 }
 0x33c   :  { %v1295_v36 = vpop.f32.mrf.mxu0 }
 0x33d   :  { %v1296_v44 = vadd.f32 %v1295_v36, %v1225_v40  ;;  %v1438_v61 = vmax.f32 %v1294_v48, 0.0 }
 0x33f   :  { %v1439_v55 = vmax.f32 %v1296_v44, 0.0  ;;  %v1459_v4 = vmul.f32 %v1447_v63, %v1438_v61 }
 0x341   :  { %v1460_v2 = vmul.f32 %v1451_v57, %v1439_v55 }
 0x343   :  { %v1462_v8 = vadd.f32 %v1460_v2, %v1459_v4 }
 0x35a   :  { %v1572_v45 = vpop.f32.mrf.mxu0 }
 0x35b   :  { %v1434_v46 = vpop.f32.mrf.mxu1 }
 0x35c   :  { %v1573_v49 = vpop.f32.mrf.mxu0 }
 0x35d   :  { %v1574_v51 = vadd.f32 %v1573_v49, %v1572_v45  ;;  %v1436_v52 = vpop.f32.mrf.mxu1 }
 0x35f   :  { %v1365_v58 = vadd.f32 %v1574_v51, %v1149_v47 }
 0x361   :  { %v1435_v0 = vadd.f32 %v1434_v46, %v1365_v58 }
 0x363   :  { %v1440_v3 = vmax.f32 %v1435_v0, 0.0 }
 0x365   :  { %v1461_v7 = vmul.f32 %v1455_v1, %v1440_v3 }
 0x367   :  { %v1463_v10 = vsel %vm784_vm4, %v1461_v7, 0.0 }
 0x368   :  { %v1464_v62 = vadd.f32 %v1463_v10, %v1462_v8 }
 0x36a   :  { %1465 = vadd.xlane.f32.xlu1 %v1464_v62 }
 0x3f3   :  { %v1466_v56 = vpop.xlane.xlu1 %1465 }
 0x3f4   :  { %v1469_v9 = vadd.f32 %v1468_v6, %v1466_v56 }
 0x3f6   :  { %1471 = vst.msk [vmem:[%s1979_s8] sm:$0xff] %vm1470_vm6, %v1469_v9 }
 0x3f7   :  { %1476 = vsyncpa [#allocation3], 1 }
 0x3f8   :  { %1477 = vsyncpa [#allocation6], 1 }
 0x3f9   :  { %1478 = vsyncpa [#allocation9], 1 }
 0x3fa   :  { %1479 = vsyncpa [#allocation4], 1 }

</bundles_post_ra>
